<compile_context>
chip_gen: v7x
topology: tpu7x:2x2x1
jax: 0.10.0
libtpu: 0.0.40
codegen_flags: <defaults>
</compile_context>

<pallas_src>
import functools

import jax
import jax.numpy as jnp
from jax import lax
from jax.experimental import pallas as pl
from jax.experimental.pallas import tpu as pltpu


def _round_up(x, m):
    return ((x + m - 1) // m) * m


def _sinkhorn_kernel(mt_ref, out_ref, *, n_orig, t_orig, sinkhorn_alpha,
                     weight_loss_ECR, OT_max_iter, stopThr, epsilon, k_dtype):
    # mt_ref holds (padded) M^T with shape (Tp, Np): lanes = N (the large axis).
    Tp, Np = mt_ref.shape
    inv_n = jnp.float32(1.0 / n_orig)   # torch a = ones(N)/N
    inv_t = jnp.float32(1.0 / t_orig)   # torch b = ones(T)/T

    # K^T = exp(-alpha * M^T).  The f32 upcast of M is transient (consumed by
    # the exp); only K^T (optionally bf16) stays live across the loop.
    Kt = jnp.exp(-(mt_ref[...].astype(jnp.float32)) * sinkhorn_alpha).astype(k_dtype)

    # Marginals masked to the un-padded extent.  Padded rows/lanes have K == 0
    # (pad cost is huge-but-finite) and a/b == 0, so every padded contribution
    # -- v/u updates, the residual check and the final loss -- is exactly zero.
    n_idx = lax.broadcasted_iota(jnp.int32, (1, Np), 1)
    a_vec = jnp.where(n_idx < n_orig, inv_n, jnp.float32(0.0))        # (1, Np)
    t_idx = lax.broadcasted_iota(jnp.int32, (Tp, 1), 0)
    b_vec = jnp.where(t_idx < t_orig, inv_t, jnp.float32(0.0))        # (Tp, 1)

    u0 = jnp.full((1, Np), inv_n, dtype=jnp.float32)                  # torch u init
    v0 = jnp.zeros((Tp, 1), dtype=jnp.float32)                        # set in iter 1
    # K^T u0 with u0 == 1/N everywhere: a plain row-sum (saves one K-sized
    # multiply at init).  Carried so each iteration does exactly two K passes.
    ktu0 = jnp.sum(Kt.astype(jnp.float32), axis=1, keepdims=True) * inv_n

    def cond(carry):
        _, _, _, err, cpt = carry
        return jnp.logical_and(err > stopThr, cpt < OT_max_iter)

    def body(carry):
        _, _, ktu, err, cpt = carry

        # ---- Sinkhorn update (cpt -> cpt+1) ----
        v1 = b_vec * pl.reciprocal(ktu + epsilon, approx=True)        # (Tp, 1)
        kv1 = jnp.sum(Kt * v1, axis=0, keepdims=True)                 # (1, Np) f32
        u1 = a_vec * pl.reciprocal(kv1 + epsilon, approx=True)        # (1, Np)
        ktu1 = jnp.sum(Kt * u1, axis=1, keepdims=True)                # (Tp, 1) f32
        cpt1 = cpt + 1
        # Reference's `if cpt % 50 == 1` residual check (increment-then-check),
        # gated so the full reduce + scalar handoff is skipped 49/50 trips.
        err1 = lax.cond((cpt1 % 50) == 1,
                        lambda: jnp.sum(jnp.abs(v1 * ktu1 - b_vec)),
                        lambda: err)

        # ---- Sinkhorn update (cpt+1 -> cpt+2).  cpt+2 is always even, so the
        #      reference's (cpt % 50 == 1) check can never fire here. ----
        v2 = b_vec * pl.reciprocal(ktu1 + epsilon, approx=True)
        kv2 = jnp.sum(Kt * v2, axis=0, keepdims=True)
        u2 = a_vec * pl.reciprocal(kv2 + epsilon, approx=True)
        ktu2 = jnp.sum(Kt * u2, axis=1, keepdims=True)

        # Keep the torch while-loop's exact stopping semantics: only commit the
        # second update if the reference loop would have entered it.
        take2 = jnp.logical_and(err1 > stopThr, cpt1 < OT_max_iter)
        u_n = jnp.where(take2, u2, u1)
        v_n = jnp.where(take2, v2, v1)
        ktu_n = jnp.where(take2, ktu2, ktu1)
        cpt_n = jnp.where(take2, cpt1 + 1, cpt1)
        return (u_n, v_n, ktu_n, err1, cpt_n)

    u, v, _, _, _ = lax.while_loop(
        cond, body, (u0, v0, ktu0, jnp.float32(1.0), jnp.int32(0)))

    # transp = u * (K * v^T)  ->  transp^T = (u_row * K^T) * v_col.
    # Re-read / re-upcast M here instead of holding an f32 copy across the loop.
    transp_t = (u * Kt) * v
    loss = jnp.sum(transp_t.astype(jnp.float32) * mt_ref[...].astype(jnp.float32))
    out_ref[0, 0] = loss * weight_loss_ECR


def sinkhorn_ot_loss(M, *, weight_loss_ECR=100.0, sinkhorn_alpha=20.0,
                     OT_max_iter=1000, stopThr=0.005, epsilon=1e-16,
                     k_dtype=None):
    """Pallas-backed equivalent of SinkhornOTLoss.forward(M), M: (N, T)."""
    N, T = M.shape
    m_itemsize = jnp.dtype(M.dtype).itemsize

    # K storage dtype: bf16 where the VPU handles bf16 natively (v6e / v7x),
    # f32 elsewhere (v5e unpacks bf16 on the already-binding VALU).
    dev_kind = ""
    try:
        dev_kind = jax.devices()[0].device_kind.lower()
    except Exception:
        pass
    if k_dtype is None:
        k_dtype = jnp.bfloat16 if ("v6" in dev_kind or "v7" in dev_kind) else jnp.float32

    try:
        vmem_cap = int(pltpu.get_tpu_info().vmem_capacity_bytes)
    except Exception:
        vmem_cap = 64 << 20                       # conservative (v7x-sized) fallback
    vmem_budget = (vmem_cap * 4) // 5             # ~20% headroom for compiler scratch

    # Pad to full vregs: N (lanes) to x128, T (sublanes) to x8 (x16 with bf16).
    t_mult = 16 if (k_dtype == jnp.bfloat16 or M.dtype == jnp.bfloat16) else 8
    Np = _round_up(max(N, 1), 128)
    Tp = _round_up(max(T, 1), t_mult)

    def footprint(k_itemsize, tp):
        # input M^T block (x2 buffering slack) + resident K^T + transient f32 temps.
        return Np * tp * (2 * m_itemsize + k_itemsize + 8) + (2 << 20)

    if k_dtype == jnp.float32 and footprint(4, Tp) > vmem_budget:
        k_dtype = jnp.bfloat16                    # VMEM-pressure fallback (any chip)
        Tp = _round_up(max(T, 1), 16)
    est = footprint(jnp.dtype(k_dtype).itemsize, Tp)
    # TODO(synk): if `est` still exceeds vmem_budget, stream M/K from HBM in
    # lane-tile chunks instead of the whole-block design.
    vmem_limit = None
    if est > (16 << 20):                          # default scoped limit is enough otherwise
        vmem_limit = int(min(est, vmem_budget))

    # Pad cost: large but FINITE so exp underflows to exactly 0 and the final
    # transp*M sum stays NaN-free (never +inf).
    pad_cost = max(1.0e4, 1.0e3 / max(float(sinkhorn_alpha), 1e-6))

    # Lane-dense layout (N on lanes) + padding in one fused host-side copy;
    # the transpose rides along with the pad, so no extra HBM pass vs pad alone.
    Mt = jnp.pad(jnp.swapaxes(M, 0, 1), ((0, Tp - T), (0, Np - N)),
                 constant_values=pad_cost)

    kernel = functools.partial(
        _sinkhorn_kernel,
        n_orig=int(N), t_orig=int(T),
        sinkhorn_alpha=float(sinkhorn_alpha),
        weight_loss_ECR=float(weight_loss_ECR),
        OT_max_iter=int(OT_max_iter),
        stopThr=float(stopThr),
        epsilon=float(epsilon),
        k_dtype=k_dtype,
    )

    # TODO(synk): for a batch of cost matrices, add a leading batch grid axis
    # with dimension_semantics=("parallel",) to use both TensorCores on v7x.
    out = pl.pallas_call(
        kernel,
        out_shape=jax.ShapeDtypeStruct((1, 1), jnp.float32),
        in_specs=[pl.BlockSpec(memory_space=pltpu.MemorySpace.VMEM)],
        out_specs=pl.BlockSpec(memory_space=pltpu.MemorySpace.SMEM),
        compiler_params=pltpu.CompilerParams(vmem_limit_bytes=vmem_limit),
    )(Mt)
    return out[0, 0]


if __name__ == "__main__":
    key = jax.random.PRNGKey(0)
    N, T = 16, 8  # small cost matrix: N "documents" x T "topics"
    # Non-negative cost matrix (e.g. pairwise distances), deterministic.
    M = jax.random.uniform(key, (N, T), dtype=jnp.float32)

    loss = sinkhorn_ot_loss(
        M,
        weight_loss_ECR=100.0,
        sinkhorn_alpha=20.0,
        OT_max_iter=1000,
        stopThr=0.005,
    )
    loss = jax.block_until_ready(loss)
    assert jnp.isfinite(loss), "Sinkhorn loss is not finite"
    print("KERNEL_OK")
</pallas_src>

<mosaic_0001>
module attributes {stable_mosaic.version = 11 : i64} {
  func.func @_sinkhorn_kernel(%arg0: memref<8x128xf32, #tpu.memory_space<vmem>>, %arg1: memref<1x1xf32, #tpu.memory_space<smem>>) attributes {dimension_semantics = [], scalar_prefetch = 0 : i64, scratch_operands = 0 : i64, tpu.core_type = #tpu.core_type<tc>} {
    %c0 = arith.constant 0 : index
    %c0_0 = arith.constant 0 : index
    %0 = vector.load %arg0[%c0, %c0_0] : memref<8x128xf32, #tpu.memory_space<vmem>>, vector<8x128xf32>
    %cst = arith.constant 0.000000e+00 : f32
    %1 = vector.broadcast %cst : f32 to vector<8x128xf32>
    %2 = arith.subf %1, %0 : vector<8x128xf32>
    %cst_1 = arith.constant 2.000000e+01 : f32
    %3 = vector.broadcast %cst_1 : f32 to vector<8x128xf32>
    %4 = arith.mulf %2, %3 : vector<8x128xf32>
    %5 = math.exp %4 : vector<8x128xf32>
    %6 = tpu.iota {dimensions = array<i32: 1>} : vector<1x128xi32>
    %c16_i32 = arith.constant 16 : i32
    %7 = vector.broadcast %c16_i32 : i32 to vector<1x128xi32>
    %8 = arith.cmpi slt, %6, %7 : vector<1x128xi32>
    %cst_2 = arith.constant 6.250000e-02 : f32
    %cst_3 = arith.constant 0.000000e+00 : f32
    %9 = vector.broadcast %cst_2 : f32 to vector<1x128xf32>
    %10 = vector.broadcast %cst_3 : f32 to vector<1x128xf32>
    %11 = arith.select %8, %9, %10 : vector<1x128xi1>, vector<1x128xf32>
    %12 = tpu.iota {dimensions = array<i32: 0>} : vector<8x1xi32>
    %c8_i32 = arith.constant 8 : i32
    %13 = vector.broadcast %c8_i32 : i32 to vector<8x1xi32>
    %14 = arith.cmpi slt, %12, %13 : vector<8x1xi32>
    %cst_4 = arith.constant 1.250000e-01 : f32
    %cst_5 = arith.constant 0.000000e+00 : f32
    %15 = vector.broadcast %cst_4 : f32 to vector<8x1xf32>
    %16 = vector.broadcast %cst_5 : f32 to vector<8x1xf32>
    %17 = arith.select %14, %15, %16 : vector<8x1xi1>, vector<8x1xf32>
    %cst_6 = arith.constant 6.250000e-02 : f32
    %18 = vector.broadcast %cst_6 : f32 to vector<1x128xf32>
    %cst_7 = arith.constant 0.000000e+00 : f32
    %19 = vector.broadcast %cst_7 : f32 to vector<8x1xf32>
    %cst_8 = arith.constant dense<0.000000e+00> : vector<8xf32>
    %20 = vector.multi_reduction <add>, %5, %cst_8 [1] : vector<8x128xf32> to vector<8xf32>
    %21 = vector.shape_cast %20 : vector<8xf32> to vector<8x1xf32>
    %cst_9 = arith.constant 6.250000e-02 : f32
    %22 = vector.broadcast %cst_9 : f32 to vector<8x1xf32>
    %23 = arith.mulf %21, %22 : vector<8x1xf32>
    %cst_10 = arith.constant 1.000000e+00 : f32
    %c0_i32 = arith.constant 0 : i32
    %24:5 = scf.while (%arg2 = %18, %arg3 = %19, %arg4 = %23, %arg5 = %cst_10, %arg6 = %c0_i32) : (vector<1x128xf32>, vector<8x1xf32>, vector<8x1xf32>, f32, i32) -> (vector<1x128xf32>, vector<8x1xf32>, vector<8x1xf32>, f32, i32) {
      %cst_17 = arith.constant 5.000000e-03 : f32
      %37 = arith.cmpf ogt, %arg5, %cst_17 : f32
      %c1000_i32 = arith.constant 1000 : i32
      %38 = arith.cmpi slt, %arg6, %c1000_i32 : i32
      %39 = arith.andi %37, %38 : i1
      scf.condition(%39) %arg2, %arg3, %arg4, %arg5, %arg6 : vector<1x128xf32>, vector<8x1xf32>, vector<8x1xf32>, f32, i32
    } do {
    ^bb0(%arg2: vector<1x128xf32>, %arg3: vector<8x1xf32>, %arg4: vector<8x1xf32>, %arg5: f32, %arg6: i32):
      %cst_17 = arith.constant 1.000000e-16 : f32
      %37 = vector.broadcast %cst_17 : f32 to vector<8x1xf32>
      %38 = arith.addf %arg4, %37 : vector<8x1xf32>
      %39 = tpu.reciprocal %38 {approx = true} : vector<8x1xf32> -> vector<8x1xf32>
      %40 = arith.mulf %17, %39 : vector<8x1xf32>
      %41 = vector.broadcast %40 : vector<8x1xf32> to vector<8x128xf32>
      %42 = arith.mulf %5, %41 : vector<8x128xf32>
      %cst_18 = arith.constant dense<0.000000e+00> : vector<128xf32>
      %43 = vector.multi_reduction <add>, %42, %cst_18 [0] : vector<8x128xf32> to vector<128xf32>
      %44 = vector.shape_cast %43 : vector<128xf32> to vector<1x128xf32>
      %cst_19 = arith.constant 1.000000e-16 : f32
      %45 = vector.broadcast %cst_19 : f32 to vector<1x128xf32>
      %46 = arith.addf %44, %45 : vector<1x128xf32>
      %47 = tpu.reciprocal %46 {approx = true} : vector<1x128xf32> -> vector<1x128xf32>
      %48 = arith.mulf %11, %47 : vector<1x128xf32>
      %49 = vector.broadcast %48 : vector<1x128xf32> to vector<8x128xf32>
      %50 = arith.mulf %5, %49 : vector<8x128xf32>
      %cst_20 = arith.constant dense<0.000000e+00> : vector<8xf32>
      %51 = vector.multi_reduction <add>, %50, %cst_20 [1] : vector<8x128xf32> to vector<8xf32>
      %52 = vector.shape_cast %51 : vector<8xf32> to vector<8x1xf32>
      %c1_i32 = arith.constant 1 : i32
      %53 = arith.addi %arg6, %c1_i32 : i32
      %c50_i32 = arith.constant 50 : i32
      %c0_i32_21 = arith.constant 0 : i32
      %54 = arith.cmpi eq, %c50_i32, %c0_i32_21 : i32
      %c1_i32_22 = arith.constant 1 : i32
      %55 = arith.select %54, %c1_i32_22, %c50_i32 : i32
      %56 = arith.remsi %53, %55 : i32
      %c0_i32_23 = arith.constant 0 : i32
      %57 = arith.cmpi ne, %56, %c0_i32_23 : i32
      %c0_i32_24 = arith.constant 0 : i32
      %58 = arith.cmpi slt, %56, %c0_i32_24 : i32
      %c0_i32_25 = arith.constant 0 : i32
      %59 = arith.cmpi slt, %55, %c0_i32_25 : i32
      %60 = arith.xori %58, %59 : i1
      %61 = arith.andi %60, %57 : i1
      %62 = arith.addi %56, %55 : i32
      %63 = arith.select %61, %62, %56 : i32
      %c1_i32_26 = arith.constant 1 : i32
      %64 = arith.cmpi eq, %63, %c1_i32_26 : i32
      %65 = arith.extui %64 : i1 to i32
      %c0_i32_27 = arith.constant 0 : i32
      %66 = arith.cmpi ne, %65, %c0_i32_27 : i32
      %67 = scf.if %66 -> (f32) {
        %92 = arith.mulf %40, %52 : vector<8x1xf32>
        %93 = arith.subf %92, %17 : vector<8x1xf32>
        %94 = math.absf %93 : vector<8x1xf32>
        %95 = vector.shape_cast %94 : vector<8x1xf32> to vector<1x8x1xf32>
        %cst_34 = arith.constant dense<0.000000e+00> : vector<1xf32>
        %96 = vector.multi_reduction <add>, %95, %cst_34 [1, 2] : vector<1x8x1xf32> to vector<1xf32>
        %97 = vector.shape_cast %96 : vector<1xf32> to vector<1x1x1xf32>
        %98 = vector.extract %97[0, 0, 0] : f32 from vector<1x1x1xf32>
        scf.yield %98 : f32
      } else {
        scf.yield %arg5 : f32
      }
      %cst_28 = arith.constant 1.000000e-16 : f32
      %68 = vector.broadcast %cst_28 : f32 to vector<8x1xf32>
      %69 = arith.addf %52, %68 : vector<8x1xf32>
      %70 = tpu.reciprocal %69 {approx = true} : vector<8x1xf32> -> vector<8x1xf32>
      %71 = arith.mulf %17, %70 : vector<8x1xf32>
      %72 = vector.broadcast %71 : vector<8x1xf32> to vector<8x128xf32>
      %73 = arith.mulf %5, %72 : vector<8x128xf32>
      %cst_29 = arith.constant dense<0.000000e+00> : vector<128xf32>
      %74 = vector.multi_reduction <add>, %73, %cst_29 [0] : vector<8x128xf32> to vector<128xf32>
      %75 = vector.shape_cast %74 : vector<128xf32> to vector<1x128xf32>
      %cst_30 = arith.constant 1.000000e-16 : f32
      %76 = vector.broadcast %cst_30 : f32 to vector<1x128xf32>
      %77 = arith.addf %75, %76 : vector<1x128xf32>
      %78 = tpu.reciprocal %77 {approx = true} : vector<1x128xf32> -> vector<1x128xf32>
      %79 = arith.mulf %11, %78 : vector<1x128xf32>
      %80 = vector.broadcast %79 : vector<1x128xf32> to vector<8x128xf32>
      %81 = arith.mulf %5, %80 : vector<8x128xf32>
      %cst_31 = arith.constant dense<0.000000e+00> : vector<8xf32>
      %82 = vector.multi_reduction <add>, %81, %cst_31 [1] : vector<8x128xf32> to vector<8xf32>
      %83 = vector.shape_cast %82 : vector<8xf32> to vector<8x1xf32>
      %cst_32 = arith.constant 5.000000e-03 : f32
      %84 = arith.cmpf ogt, %67, %cst_32 : f32
      %c1000_i32 = arith.constant 1000 : i32
      %85 = arith.cmpi slt, %53, %c1000_i32 : i32
      %86 = arith.andi %84, %85 : i1
      %87 = arith.select %86, %79, %48 : vector<1x128xf32>
      %88 = arith.select %86, %71, %40 : vector<8x1xf32>
      %89 = arith.select %86, %83, %52 : vector<8x1xf32>
      %c1_i32_33 = arith.constant 1 : i32
      %90 = arith.addi %53, %c1_i32_33 : i32
      %91 = arith.select %86, %90, %53 : i32
      scf.yield %87, %88, %89, %67, %91 : vector<1x128xf32>, vector<8x1xf32>, vector<8x1xf32>, f32, i32
    }
    %25 = vector.broadcast %24#0 : vector<1x128xf32> to vector<8x128xf32>
    %26 = arith.mulf %25, %5 : vector<8x128xf32>
    %27 = vector.broadcast %24#1 : vector<8x1xf32> to vector<8x128xf32>
    %28 = arith.mulf %26, %27 : vector<8x128xf32>
    %c0_11 = arith.constant 0 : index
    %c0_12 = arith.constant 0 : index
    %29 = vector.load %arg0[%c0_11, %c0_12] : memref<8x128xf32, #tpu.memory_space<vmem>>, vector<8x128xf32>
    %30 = arith.mulf %28, %29 : vector<8x128xf32>
    %31 = vector.shape_cast %30 : vector<8x128xf32> to vector<1x8x128xf32>
    %cst_13 = arith.constant dense<0.000000e+00> : vector<1xf32>
    %32 = vector.multi_reduction <add>, %31, %cst_13 [1, 2] : vector<1x8x128xf32> to vector<1xf32>
    %33 = vector.shape_cast %32 : vector<1xf32> to vector<1x1x1xf32>
    %34 = vector.extract %33[0, 0, 0] : f32 from vector<1x1x1xf32>
    %cst_14 = arith.constant 1.000000e+02 : f32
    %35 = arith.mulf %34, %cst_14 : f32
    %c0_15 = arith.constant 0 : index
    %c0_16 = arith.constant 0 : index
    %36 = memref.load %arg1[%c0_15, %c0_16] : memref<1x1xf32, #tpu.memory_space<smem>>
    memref.store %35, %arg1[%c0_15, %c0_16] : memref<1x1xf32, #tpu.memory_space<smem>>
    return
  }
}

</mosaic_0001>

<bundles_post_ra>
// kernel: tpu_custom_call.1
= control target key start
LH: loop header
LB: loop body
LE: loop exit
PB: predicated region body
PF: predicated region fallthrough
CT: control target
= control target key end

     0   :  { %6 = vsyncpa [#allocation3], 0  ;;  %s404_s0 = inlined_call_operand.hbm [shape: f32[8,128], index: 0, kind: input, shape index: {}]   ;;  %s405_s1 = inlined_call_operand.hbm [shape: f32[1,1], index: 1, kind: output, shape index: {}]  }
   0x1   :  { %7 = vsyncpa [#allocation4], 0  ;;  %s308_s6 = smov [#allocation2]   ;;  %s240_s10 = scalar_lea.hbm %s404_s0, 128 }
   0x2   :  { %s14_s7 = sshll.u32 %s308_s6, 4  ;;  %p241_p0 = scmp.ne.s32.totalorder %s404_s0, %s240_s10  ;;  %s15_s7 = int_to_ptr.vmem [resolvable:$true] %s14_s7 }
   0x3   :  { %p244_p1 = scmp.lt.u32.totalorder %s240_s10, %s404_s0 }
   0x5   :  { %p246_p2 = pnand %p244_p1, %p241_p0 }
   0x7   :  { %249 = shalt.err (!%p246_p2)
}
   0x8   :  { %s250_s15 = scalar_lea.vmem %s15_s7, 128  ;;  %p255_p4 = scmp.lt.s32.totalorder %s15_s7, %s15_s7 }
   0x9   :  { %p251_p3 = scmp.ne.s32.totalorder %s15_s7, %s250_s15  ;;  %p256_p5 = scmp.lt.s32.totalorder %s250_s15, %s250_s15 }
   0xb   :  { %p257_p6 = por %p256_p5, %p255_p4 }
   0xd   :  { %p258_p7 = pnand %p257_p6, %p251_p3 }
   0xf   :  { %261 = shalt.err (!%p258_p7)
}
  0x10   :  { %17 = dma.hbm_to_vmem [thread:$0]  %s404_s0, 128, %s15_s7, [#allocation3]  }
  0x11   :  { %288 = dma.done.wait [#allocation3], 128  }
  0x12   :  { %289 = vsyncadd [#allocation3], 4294967168  ;;  %v26_v0 = vlaneseq  ;;  %v309_v2 = vmov 0.0   ;;  %v335_v4 = vld [vmem:[#allocation2] sm:$0xff]  ;;  %s341_s0 = smov 0   ;;  %s343_s18 = smov 1.0  }
  0x13   :  { %v22_v5 = vsub.f32 0.0, %v335_v4 }
  0x14   :  { %v27_v1 = vand.u32 127, %v26_v0 }
  0x15   :  { %v23_v6 = vmul.f32 20.0, %v22_v5 }
  0x16   :  { %vm28_vm0 = vcmp.lt.s32.totalorder %v27_v1, 16 }
  0x17   :  { %v333_v3 = vsel %vm28_vm0, 0.0625, %v309_v2  ;;  %v24_v7 = vmul.f32 1.442695, %v23_v6 }
  0x19   :  { %228 = vpow2.f32 %v24_v7 }
  0x23   :  { %v338_v8 = vpop.eup %228 }
  0x24   :  { %34 = vadd.xlane.f32.xlu0 %v338_v8 }
  0xb1   :  { %v35_v9 = vpop.xlane.xlu0 %34 }
  0xb2   :  { %v36_v10 = vmul.f32 0.0625, %v35_v9  }
  0xb3 LB: > { %v49_v11 = vadd.f32 1e-16, %v302_v10  ;;  %s359_s19 = sadd.s32 1, %s294_s0  ;;  %s304_s25 = smov 0   ;;  %v302_v10 = vphi %v36_v10, %v127_v10   ;;  %s298_s18 = sphi %s343_s18, %s412_s18   ;;  %s294_s0 = sphi %s341_s0, %s406_s0  }
  0xb4   : > { %s67_s20 = ssub.s32 0, %s359_s19  ;;  %p66_p8 = scmp.lt.s32.totalorder %s359_s19, 0 }
  0xb5   : > { %232 = vrcp.f32 %v49_v11  ;;  %s178_s21 = smin.u32 %s67_s20, %s359_s19 }
  0xb6   : > { %230 = sdivrem.u32 %s178_s21, 50 }
  0xbf   : > { %v233_v12 = vpop.eup %232  ;;  %s231_s22 = spop.drf %230 }
  0xc0   : > { %v354_v13 = vmul.f32 0.125, %v233_v12  ;;  %s71_s23 = ssub.s32 0, %s231_s22 }
  0xc1   : > { %s408_s23 = smov (!%p66_p8, %s71_s23), %s231_s22 }
  0xc2   : > { %v52_v14 = vmul.f32 %v338_v8, %v354_v13  ;;  %p180_p9 = scmp.lt.s32.totalorder %s408_s23, 0  ;;  %s77_s24 = sadd.s32 50, %s408_s23 }
  0xc4   : > { %v53_v15 = vrot.slane %v52_v14, 4  ;;  %s410_s24 = smov (!%p180_p9, %s77_s24), %s408_s23 }
  0xc5   : > { %p181_p10 = scmp.ne.s32.totalorder %s410_s24, 1 }
  0xc6   : > { %v54_v16 = vadd.f32 %v53_v15, %v52_v14  ;;  %vm86_vm1 = vcmask (!%p181_p10), 7168  }
  0xc8   : > { %v55_v17 = vrot.slane %v54_v16, 2 }
  0xca   : > { %v56_v18 = vadd.f32 %v55_v17, %v54_v16 }
  0xcc   : > { %v57_v19 = vrot.slane %v56_v18, 1 }
  0xce   : > { %v58_v20 = vadd.f32 %v57_v19, %v56_v18 }
  0xd0   : > { %v59_v21 = vadd.f32 1e-16, %v58_v20 }
  0xd2   : > { %234 = vrcp.f32 %v59_v21 }
  0xdc   : > { %v235_v22 = vpop.eup %234 }
  0xdd   : > { %v61_v23 = vmul.f32 %v235_v22, %v333_v3 }
  0xdf   : > { %v62_v24 = vmul.f32 %v338_v8, %v61_v23 }
  0xe1   : > { %63 = vadd.xlane.f32.xlu0 %v62_v24 }
 0x168   : > { %82 = sbr.rel (%p181_p10) target bundleno = 578 (0x242), region = 20 }
 0x16e   : > { %v64_v25 = vpop.xlane.xlu0 %63 }
 0x16f   : > { %v83_v26 = vmul.f32 %v64_v25, %v354_v13 }
 0x171   : > { %v182_v27 = vadd.f32 -0.125, %v83_v26 }
 0x173   : > { %v85_v28 = vand.u32 2147483647, %v182_v27 }
 0x175   : > { %v87_v29 = vsel %vm86_vm1, %v85_v28, 0.0 }
 0x176   : > { %88 = vadd.xlane.f32.xlu0 %v87_v29 }
 0x203   : > { %v89_v30 = vpop.xlane.xlu0 %88 }
 0x204   : > { %v90_v31 = vrot.slane %v89_v30, 4 }
 0x206   : > { %v91_v32 = vadd.f32 %v90_v31, %v89_v30 }
 0x208   : > { %v92_v33 = vrot.slane %v91_v32, 2 }
 0x20a   : > { %v93_v34 = vadd.f32 %v92_v33, %v91_v32 }
 0x20c   : > { %v94_v35 = vrot.slane %v93_v34, 1 }
 0x20e   : > { %v95_v36 = vadd.f32 %v94_v35, %v93_v34 }
 0x210   : > { %185 = vpush %v95_v36 }
 0x241   : > { %s186_s25 = spop %185  }
 0x242 PF: > { %v102_v37 = vadd.f32 1e-16, %v64_v25  ;;  %s412_s18 = smov (!%p181_p10, %s298_s18), %s306_s25  ;;  %p119_p12 = scmp.lt.s32.totalorder %s359_s19, 1000  ;;  %s306_s25 = sphi %s304_s25, %s186_s25  }
 0x243   : > { %p118_p11 = scmp.gt.f32.partialorder %s412_s18, 0.005  ;;  %s128_s27 = sadd.s32 2, %s294_s0 }
 0x244   : > { %236 = vrcp.f32 %v102_v37 }
 0x245   : > { %p120_p13 = pnand %p119_p12, %p118_p11 }
 0x247   : > { %s183_s26 = scalar_select %p120_p13, 0, 1 }
 0x248   : > { %s414_s19 = smov (!%p120_p13, %s359_s19), %s128_s27 }
 0x249   : > { %v123_v51 = vstv %s183_s26  ;;  %p44_p0 = scmp.lt.s32.totalorder %s414_s19, 1000  ;;  %s406_s0 = smov %s414_s19 }
 0x24a   : > { %vm124_vm2 = vcmp.eq.s32.totalorder %v123_v51, 1 }
 0x24b   : > { %p45_p1 = pnand %p118_p11, %p44_p0 }
 0x24c   :  { %s262_s3 = scalar_lea.hbm (%p45_p1), %s405_s1, 16 }
 0x24d   :  { %p263_p2 = scmp.ne.s32.totalorder (%p45_p1), %s405_s1, %s262_s3  ;;  %p266_p3 = scmp.lt.u32.totalorder (%p45_p1), %s262_s3, %s405_s1 }
 0x24e   : > { %v237_v38 = vpop.eup %236 }
 0x24f   : > { %v104_v39 = vmul.f32 0.125, %v237_v38  ;;  %p268_p4 = pnand (%p45_p1), %p266_p3, %p263_p2 }
 0x251   : > { %v105_v40 = vmul.f32 %v338_v8, %v104_v39  ;;  %v126_v53 = vsel %vm124_vm2, %v104_v39, %v354_v13 }
 0x253   : > { %v106_v41 = vrot.slane %v105_v40, 4 }
 0x255   : > { %v107_v42 = vadd.f32 %v106_v41, %v105_v40 }
 0x257   : > { %v108_v43 = vrot.slane %v107_v42, 2 }
 0x259   : > { %v109_v44 = vadd.f32 %v108_v43, %v107_v42 }
 0x25b   : > { %v110_v45 = vrot.slane %v109_v44, 1 }
 0x25d   : > { %v111_v46 = vadd.f32 %v110_v45, %v109_v44 }
 0x25f   : > { %v112_v47 = vadd.f32 1e-16, %v111_v46 }
 0x261   : > { %238 = vrcp.f32 %v112_v47 }
 0x26b   : > { %v239_v48 = vpop.eup %238 }
 0x26c   : > { %v114_v49 = vmul.f32 %v239_v48, %v333_v3 }
 0x26e   : > { %v115_v50 = vmul.f32 %v338_v8, %v114_v49  ;;  %v125_v52 = vsel %vm124_vm2, %v114_v49, %v61_v23 }
 0x26f   :  { %v130_v55 = vmul.f32 (%p45_p1), %v338_v8, %v125_v52 }
 0x270   : > { %116 = vadd.xlane.f32.xlu0 %v115_v50 }
 0x271   :  { %v131_v56 = vmul.f32 (%p45_p1), %v130_v55, %v126_v53 }
 0x273   :  { %v132_v57 = vmul.f32 (%p45_p1), %v131_v56, %v335_v4 }
 0x275   :  { %133 = vadd.xlane.f32.xlu0 (%p45_p1), %v132_v57 }
 0x2f8   :  { %48 = sbr.rel (!%p45_p1) target bundleno = 179 (0xb3), region = 44 }
 0x2fd   : > { %v117_v54 = vpop.xlane.xlu0 %116 }
 0x2fe   : > { %v127_v10 = vsel %vm124_vm2, %v117_v54, %v64_v25  }
 0x302   :  { %v134_v58 = vpop.xlane.xlu0 %133 }
 0x303   :  { %v135_v59 = vrot.slane %v134_v58, 4 }
 0x305   :  { %v136_v60 = vadd.f32 %v135_v59, %v134_v58 }
 0x307   :  { %v137_v61 = vrot.slane %v136_v60, 2 }
 0x309   :  { %v138_v62 = vadd.f32 %v137_v61, %v136_v60 }
 0x30b   :  { %v139_v63 = vrot.slane %v138_v62, 1 }
 0x30d   :  { %v140_v0 = vadd.f32 %v139_v63, %v138_v62 }
 0x30f   :  { %187 = vpush %v140_v0 }
 0x340   :  { %s188_s28 = spop %187 }
 0x341   :  { %s142_s29 = smul.f32 100.0, %s188_s28 }
 0x343   :  { %144 = sst [smem:[#allocation5]] %s142_s29 }
 0x344   :  { %271 = shalt.err (!%p268_p4)
}
 0x345   :  { %s310_s8 = smov [#allocation5]  }
 0x346   :  { %152 = dma.smem_to_hbm %s310_s8, 16, %s405_s1, [#allocation4]  }
 0x347   :  { %290 = dma.done.wait [#allocation4], 16  }
 0x348   :  { %291 = vsyncadd [#allocation4], 4294967280 }
 0x349   :  { %156 = sfence }
 0x34a   :  { %157 = vsyncpa [#allocation3], 1 }
 0x34b   :  { %158 = vsyncpa [#allocation4], 1 }

</bundles_post_ra>
